<compile_context>
chip_gen: v5e
topology: v5e:2x2
jax: 0.10.0
libtpu: 0.0.40
codegen_flags: <defaults>
</compile_context>

<pallas_src>
import jax
import jax.numpy as jnp
from jax.experimental import pallas as pl
from jax.experimental.pallas import tpu as pltpu


def _round_up(x, m):
    return -(-x // m) * m


def _conv1d_mlp_kernel(x_ref, w1_ref, b1_ref, w2_ref, b2_ref, w3_ref, b3_ref,
                       out_ref):
    """One batch tile: three MXU matmuls, LeakyReLU(0.01) on the first two."""
    x = x_ref[...]                                            # (tb, K), bf16

    # Layer 0: Conv1d(kernel_size=L)  ==  Linear(C*L -> H1), + LeakyReLU(0.01).
    h = jnp.dot(x, w1_ref[...], preferred_element_type=jnp.float32)
    h = h + b1_ref[...]
    h = jnp.maximum(h, 0.01 * h)                              # single VPU op

    # Layer 1: Linear(H1 -> H2) + LeakyReLU(0.01).
    h = jnp.dot(h.astype(w2_ref.dtype), w2_ref[...],
                preferred_element_type=jnp.float32)
    h = h + b2_ref[...]
    h = jnp.maximum(h, 0.01 * h)

    # Layer 2: Linear(H2 -> n_output_padded), no activation (Conv1dMLP.forward).
    out = jnp.dot(h.astype(w3_ref.dtype), w3_ref[...],
                  preferred_element_type=jnp.float32)
    out = out + b3_ref[...]
    out_ref[...] = out.astype(out_ref.dtype)


def conv1d_mlp_forward(obs, params, *, block_b=None,
                       compute_dtype=jnp.bfloat16):
    """obs: (B, C, L) float array.  Returns (B, n_output) float32."""
    B = obs.shape[0]
    x = obs.reshape(B, -1).astype(compute_dtype)       # (B, C*L), contiguous
    K = x.shape[1]

    w1 = params["w1"].astype(compute_dtype)
    w2 = params["w2"].astype(compute_dtype)
    w3 = params["w3"].astype(compute_dtype)
    b1 = params["b1"].astype(jnp.float32)
    b2 = params["b2"].astype(jnp.float32)
    b3 = params["b3"].astype(jnp.float32)
    H1, H2, n_out = w1.shape[1], w2.shape[1], w3.shape[1]

    # Lane-dense output: pad the final layer to a multiple of 128 output
    # columns (zero weight columns / zero bias) so stores are unmasked vst.
    n_out_pad = _round_up(n_out, 128)
    if n_out_pad != n_out:
        w3 = jnp.pad(w3, ((0, 0), (0, n_out_pad - n_out)))
        b3 = jnp.pad(b3, ((0, 0), (0, n_out_pad - n_out)))

    # Batch-tile selection.  Big tiles amortize per-grid-step overhead; keep
    # >= 2 grid steps whenever the batch is large enough so v7x's two
    # TensorCores both get work.  Tiles are multiples of 256 at large B and
    # of 8 otherwise; a batch smaller than one tile uses a single full-extent
    # block (always layout-legal).
    if block_b is None:
        block_b = 2048
    if B > block_b:
        tb = max(8, _round_up(block_b, 8))
    elif B >= 512:
        tb = _round_up(pl.cdiv(B, 2), 256)
    elif B >= 64:
        tb = _round_up(pl.cdiv(B, 2), 8)
    else:
        tb = B
    grid = pl.cdiv(B, tb)

    const2 = lambda i: (0, 0)   # weights/biases: same block every grid step

    in_bytes = jnp.dtype(compute_dtype).itemsize
    cost = pl.CostEstimate(
        flops=2 * B * (K * H1 + H1 * H2 + H2 * n_out_pad),
        transcendentals=0,
        bytes_accessed=(in_bytes * (B * K + K * H1 + H1 * H2 + H2 * n_out_pad)
                        + 4 * (H1 + H2 + n_out_pad)
                        + 4 * B * n_out_pad),
    )

    out = pl.pallas_call(
        _conv1d_mlp_kernel,
        out_shape=jax.ShapeDtypeStruct((B, n_out_pad), jnp.float32),
        grid_spec=pltpu.PrefetchScalarGridSpec(
            num_scalar_prefetch=0,
            grid=(grid,),
            in_specs=[
                pl.BlockSpec((tb, K), lambda i: (i, 0)),   # activations: tiled
                pl.BlockSpec((K, H1), const2),             # weights/biases:
                pl.BlockSpec((1, H1), const2),             #   constant block ->
                pl.BlockSpec((H1, H2), const2),            #   DMA'd once, stay
                pl.BlockSpec((1, H2), const2),             #   resident in VMEM
                pl.BlockSpec((H2, n_out_pad), const2),
                pl.BlockSpec((1, n_out_pad), const2),
            ],
            out_specs=pl.BlockSpec((tb, n_out_pad), lambda i: (i, 0)),
        ),
        compiler_params=pltpu.CompilerParams(
            dimension_semantics=("parallel",),
            vmem_limit_bytes=32 * 1024 * 1024),
        cost_estimate=cost,
    )(x, w1, b1, w2, b2, w3, b3)

    return out[:, :n_out] if n_out_pad != n_out else out


def init_params(key, input_shape, n_output, layers_dim=(256, 256)):
    """PyTorch-style U(-1/sqrt(fan_in), ..) init.

    Returns (torch_layout, kernel_layout): the former mirrors nn.Conv1d /
    nn.Linear parameter shapes (for the reference), the latter is the
    (in, out) layout consumed by the Pallas kernel.
    """
    C, L = input_shape
    H1, H2 = layers_dim

    def uniform(k, shape, fan_in):
        bound = 1.0 / jnp.sqrt(fan_in)
        return jax.random.uniform(k, shape, jnp.float32, -bound, bound)

    ks = jax.random.split(key, 6)
    w_conv = uniform(ks[0], (H1, C, L), C * L)       # Conv1d weight (out, C, L)
    b1 = uniform(ks[1], (H1,), C * L)
    w2_pt = uniform(ks[2], (H2, H1), H1)             # Linear weight (out, in)
    b2 = uniform(ks[3], (H2,), H1)
    w3_pt = uniform(ks[4], (n_output, H2), H2)
    b3 = uniform(ks[5], (n_output,), H2)

    torch_layout = {"w_conv": w_conv, "b1": b1, "w2": w2_pt, "b2": b2,
                    "w3": w3_pt, "b3": b3}
    kernel_layout = {
        "w1": w_conv.reshape(H1, C * L).T,           # (C*L, H1)
        "b1": b1.reshape(1, H1),
        "w2": w2_pt.T, "b2": b2.reshape(1, H2),
        "w3": w3_pt.T, "b3": b3.reshape(1, n_output),
    }
    return torch_layout, kernel_layout


def reference_forward(obs, tp):
    """Pure-JAX re-implementation of Conv1dMLP.forward (PyTorch layout, f32)."""
    hp = jax.lax.Precision.HIGHEST
    # Conv1d with kernel_size == L over a length-L input, then squeeze(2).
    h = jnp.einsum("bcl,ocl->bo", obs, tp["w_conv"], precision=hp) + tp["b1"]
    h = jnp.where(h >= 0, h, 0.01 * h)
    h = jnp.einsum("bi,oi->bo", h, tp["w2"], precision=hp) + tp["b2"]
    h = jnp.where(h >= 0, h, 0.01 * h)
    return jnp.einsum("bi,oi->bo", h, tp["w3"], precision=hp) + tp["b3"]


if __name__ == "__main__":
    B, C, L = 2, 4, 16           # obs: (batch, channels, spatial)
    n_output = 32
    layers_dim = (256, 256)

    key = jax.random.PRNGKey(0)
    k_obs, k_par, k_obs2 = jax.random.split(key, 3)
    torch_params, kernel_params = init_params(k_par, (C, L), n_output,
                                              layers_dim)

    # Small-batch path: single full-extent batch tile, bf16 MXU operands.
    obs = jax.random.normal(k_obs, (B, C, L), jnp.float32)
    out = jax.block_until_ready(conv1d_mlp_forward(obs, kernel_params))
    ref = reference_forward(obs, torch_params)
    assert out.shape == (B, n_output)
    assert jnp.allclose(out, ref, atol=5e-2, rtol=5e-2), (
        f"bf16 path: max abs err {jnp.max(jnp.abs(out - ref))}")

    # f32 compute path matches the reference tightly.
    out32 = jax.block_until_ready(
        conv1d_mlp_forward(obs, kernel_params, compute_dtype=jnp.float32))
    assert jnp.allclose(out32, ref, atol=1e-3, rtol=1e-3), (
        f"f32 path: max abs err {jnp.max(jnp.abs(out32 - ref))}")

    # Multi-step grid with a ragged (masked) final batch tile.
    B2 = 72
    obs2 = jax.random.normal(k_obs2, (B2, C, L), jnp.float32)
    out2 = jax.block_until_ready(conv1d_mlp_forward(obs2, kernel_params))
    ref2 = reference_forward(obs2, torch_params)
    assert out2.shape == (B2, n_output)
    assert jnp.allclose(out2, ref2, atol=5e-2, rtol=5e-2), (
        f"ragged path: max abs err {jnp.max(jnp.abs(out2 - ref2))}")

    print("KERNEL_OK")
</pallas_src>

<mosaic_0001>
module attributes {stable_mosaic.version = 11 : i64} {
  func.func @_conv1d_mlp_kernel(%arg0: i32, %arg1: memref<2x64xbf16, #tpu.memory_space<vmem>>, %arg2: memref<64x256xbf16, #tpu.memory_space<vmem>>, %arg3: memref<1x256xf32, #tpu.memory_space<vmem>>, %arg4: memref<256x256xbf16, #tpu.memory_space<vmem>>, %arg5: memref<1x256xf32, #tpu.memory_space<vmem>>, %arg6: memref<256x128xbf16, #tpu.memory_space<vmem>>, %arg7: memref<1x128xf32, #tpu.memory_space<vmem>>, %arg8: memref<2x128xf32, #tpu.memory_space<vmem>>) attributes {dimension_semantics = [#tpu.dimension_semantics<parallel>], iteration_bounds = array<i64: 1>, scalar_prefetch = 0 : i64, scratch_operands = 0 : i64, tpu.core_type = #tpu.core_type<tc>, window_params = [{transform_indices = @transform_0, window_bounds = array<i64: 2, 64>}, {pipeline_mode = #tpu.pipeline_mode<synchronous>, transform_indices = @transform_1, window_bounds = array<i64: 64, 256>}, {pipeline_mode = #tpu.pipeline_mode<synchronous>, transform_indices = @transform_2, window_bounds = array<i64: 1, 256>}, {pipeline_mode = #tpu.pipeline_mode<synchronous>, transform_indices = @transform_3, window_bounds = array<i64: 256, 256>}, {pipeline_mode = #tpu.pipeline_mode<synchronous>, transform_indices = @transform_4, window_bounds = array<i64: 1, 256>}, {pipeline_mode = #tpu.pipeline_mode<synchronous>, transform_indices = @transform_5, window_bounds = array<i64: 256, 128>}, {pipeline_mode = #tpu.pipeline_mode<synchronous>, transform_indices = @transform_6, window_bounds = array<i64: 1, 128>}, {transform_indices = @transform_7, window_bounds = array<i64: 2, 128>}]} {
    %c0 = arith.constant 0 : index
    %c0_0 = arith.constant 0 : index
    %0 = vector.load %arg1[%c0, %c0_0] : memref<2x64xbf16, #tpu.memory_space<vmem>>, vector<2x64xbf16>
    %c0_1 = arith.constant 0 : index
    %c0_2 = arith.constant 0 : index
    %1 = vector.load %arg2[%c0_1, %c0_2] : memref<64x256xbf16, #tpu.memory_space<vmem>>, vector<64x256xbf16>
    %cst = arith.constant dense<0.000000e+00> : vector<2x256xf32>
    %2 = tpu.matmul %0, %1, %cst {dimension_numbers = #tpu.dot_dimension_numbers<[1], [0], [0], [1], [0, 0, 1, 1], [], []>} : vector<2x64xbf16>, vector<64x256xbf16>, vector<2x256xf32> -> vector<2x256xf32>
    %c0_3 = arith.constant 0 : index
    %c0_4 = arith.constant 0 : index
    %3 = vector.load %arg3[%c0_3, %c0_4] : memref<1x256xf32, #tpu.memory_space<vmem>>, vector<1x256xf32>
    %4 = vector.broadcast %3 : vector<1x256xf32> to vector<2x256xf32>
    %5 = arith.addf %2, %4 : vector<2x256xf32>
    %cst_5 = arith.constant 0.00999999977 : f32
    %6 = vector.broadcast %cst_5 : f32 to vector<2x256xf32>
    %7 = arith.mulf %6, %5 : vector<2x256xf32>
    %8 = arith.maximumf %5, %7 : vector<2x256xf32>
    %9 = arith.truncf %8 : vector<2x256xf32> to vector<2x256xbf16>
    %c0_6 = arith.constant 0 : index
    %c0_7 = arith.constant 0 : index
    %10 = vector.load %arg4[%c0_6, %c0_7] : memref<256x256xbf16, #tpu.memory_space<vmem>>, vector<256x256xbf16>
    %cst_8 = arith.constant dense<0.000000e+00> : vector<2x256xf32>
    %11 = tpu.matmul %9, %10, %cst_8 {dimension_numbers = #tpu.dot_dimension_numbers<[1], [0], [0], [1], [0, 0, 1, 1], [], []>} : vector<2x256xbf16>, vector<256x256xbf16>, vector<2x256xf32> -> vector<2x256xf32>
    %c0_9 = arith.constant 0 : index
    %c0_10 = arith.constant 0 : index
    %12 = vector.load %arg5[%c0_9, %c0_10] : memref<1x256xf32, #tpu.memory_space<vmem>>, vector<1x256xf32>
    %13 = vector.broadcast %12 : vector<1x256xf32> to vector<2x256xf32>
    %14 = arith.addf %11, %13 : vector<2x256xf32>
    %cst_11 = arith.constant 0.00999999977 : f32
    %15 = vector.broadcast %cst_11 : f32 to vector<2x256xf32>
    %16 = arith.mulf %15, %14 : vector<2x256xf32>
    %17 = arith.maximumf %14, %16 : vector<2x256xf32>
    %18 = arith.truncf %17 : vector<2x256xf32> to vector<2x256xbf16>
    %c0_12 = arith.constant 0 : index
    %c0_13 = arith.constant 0 : index
    %19 = vector.load %arg6[%c0_12, %c0_13] : memref<256x128xbf16, #tpu.memory_space<vmem>>, vector<256x128xbf16>
    %cst_14 = arith.constant dense<0.000000e+00> : vector<2x128xf32>
    %20 = tpu.matmul %18, %19, %cst_14 {dimension_numbers = #tpu.dot_dimension_numbers<[1], [0], [0], [1], [0, 0, 1, 1], [], []>} : vector<2x256xbf16>, vector<256x128xbf16>, vector<2x128xf32> -> vector<2x128xf32>
    %c0_15 = arith.constant 0 : index
    %c0_16 = arith.constant 0 : index
    %21 = vector.load %arg7[%c0_15, %c0_16] : memref<1x128xf32, #tpu.memory_space<vmem>>, vector<1x128xf32>
    %22 = vector.broadcast %21 : vector<1x128xf32> to vector<2x128xf32>
    %23 = arith.addf %20, %22 : vector<2x128xf32>
    %c0_17 = arith.constant 0 : index
    %c0_18 = arith.constant 0 : index
    %24 = vector.load %arg8[%c0_17, %c0_18] : memref<2x128xf32, #tpu.memory_space<vmem>>, vector<2x128xf32>
    tpu.vector_store %arg8[%c0_17, %c0_18], %23 {strides = array<i32>} : memref<2x128xf32, #tpu.memory_space<vmem>>, vector<2x128xf32>,
    return
  }
  func.func @transform_0(%arg0: i32) -> (i32, i32) {
    %c0_i32 = arith.constant 0 : i32
    %c0_i32_0 = arith.constant 0 : i32
    return %arg0, %c0_i32 : i32, i32
  }
  func.func @transform_1(%arg0: i32) -> (i32, i32) {
    %c0_i32 = arith.constant 0 : i32
    %c0_i32_0 = arith.constant 0 : i32
    %c0_i32_1 = arith.constant 0 : i32
    return %c0_i32, %c0_i32_0 : i32, i32
  }
  func.func @transform_2(%arg0: i32) -> (i32, i32) {
    %c0_i32 = arith.constant 0 : i32
    %c0_i32_0 = arith.constant 0 : i32
    %c0_i32_1 = arith.constant 0 : i32
    return %c0_i32, %c0_i32_0 : i32, i32
  }
  func.func @transform_3(%arg0: i32) -> (i32, i32) {
    %c0_i32 = arith.constant 0 : i32
    %c0_i32_0 = arith.constant 0 : i32
    %c0_i32_1 = arith.constant 0 : i32
    return %c0_i32, %c0_i32_0 : i32, i32
  }
  func.func @transform_4(%arg0: i32) -> (i32, i32) {
    %c0_i32 = arith.constant 0 : i32
    %c0_i32_0 = arith.constant 0 : i32
    %c0_i32_1 = arith.constant 0 : i32
    return %c0_i32, %c0_i32_0 : i32, i32
  }
  func.func @transform_5(%arg0: i32) -> (i32, i32) {
    %c0_i32 = arith.constant 0 : i32
    %c0_i32_0 = arith.constant 0 : i32
    %c0_i32_1 = arith.constant 0 : i32
    return %c0_i32, %c0_i32_0 : i32, i32
  }
  func.func @transform_6(%arg0: i32) -> (i32, i32) {
    %c0_i32 = arith.constant 0 : i32
    %c0_i32_0 = arith.constant 0 : i32
    %c0_i32_1 = arith.constant 0 : i32
    return %c0_i32, %c0_i32_0 : i32, i32
  }
  func.func @transform_7(%arg0: i32) -> (i32, i32) {
    %c0_i32 = arith.constant 0 : i32
    %c0_i32_0 = arith.constant 0 : i32
    return %arg0, %c0_i32 : i32, i32
  }
}

</mosaic_0001>

<bundles_post_ra>
// kernel: tpu_custom_call.1
= control target key start
LH: loop header
LB: loop body
LE: loop exit
PB: predicated region body
PF: predicated region fallthrough
CT: control target
= control target key end

     0   :  { %12 = vsyncpa [#allocation3], 0  ;;  %s1148_s0 = inlined_call_operand.hbm [shape: bf16[2,64], index: 0, kind: input, shape index: {}]   ;;  %s1149_s1 = inlined_call_operand.hbm [shape: bf16[64,256], index: 1, kind: input, shape index: {}]   ;;  %s1150_s2 = inlined_call_operand.hbm [shape: f32[1,256], index: 2, kind: input, shape index: {}]   ;;  %s1151_s3 = inlined_call_operand.hbm [shape: bf16[256,256], index: 3, kind: input, shape index: {}]   ;;  %s1152_s4 = inlined_call_operand.vmem [shape: f32[1,256], index: 4, kind: input, shape index: {}]   ;;  %s1153_s5 = inlined_call_operand.hbm [shape: bf16[256,128], index: 5, kind: input, shape index: {}]   ;;  %s1154_s6 = inlined_call_operand.vmem [shape: f32[1,128], index: 6, kind: input, shape index: {}]   ;;  %s1155_s7 = inlined_call_operand.hbm [shape: f32[2,128], index: 7, kind: output, shape index: {}]  }
   0x1   :  { %13 = vsyncpa [#allocation6], 0 }
   0x2   :  { %14 = vsyncpa [#allocation9], 0  ;;  %s31_s26 = sshll.u32 %s1149_s1, 4  ;;  %s32_s26 = int_to_ptr.hbm [resolvable:$true] %s31_s26 }
   0x3   :  { %15 = vsyncpa [#allocation4], 0  ;;  %s1072_s27 = smov [#allocation5]   ;;  %s55_s8 = sshll.u32 %s1151_s3, 4  ;;  %s56_s8 = int_to_ptr.hbm [resolvable:$true] %s55_s8 }
   0x4   :  { %s33_s28 = sshll.u32 %s1072_s27, 4  ;;  %s1073_s9 = smov 128   ;;  %s34_s28 = int_to_ptr.vmem [resolvable:$true] %s33_s28 }
   0x5   :  { %s1074_s10 = smov 8   ;;  %s1075_s11 = smov [#allocation8]  }
   0x6   :  { %39 = dma.hbm_to_vmem [thread:$0]  %s32_s26, 1024, %s34_s28, [#allocation6], %s1073_s9, %s1073_s9, %s1074_s10  }
   0x7   :  { %s57_s12 = sshll.u32 %s1075_s11, 4  ;;  %s21_s15 = sshll.u32 %s1148_s0, 4  ;;  %s58_s12 = int_to_ptr.vmem [resolvable:$true] %s57_s12  ;;  %s22_s15 = int_to_ptr.hbm [resolvable:$true] %s21_s15 }
   0x8   :  { %63 = dma.hbm_to_vmem [thread:$0]  %s56_s8, 4096, %s58_s12, [#allocation9], %s1073_s9, %s1073_s9, %s1074_s10  }
   0x9   :  { %s45_s17 = sshll.u32 %s1150_s2, 4  ;;  %s1076_s18 = smov [#allocation2]   ;;  %s46_s17 = int_to_ptr.hbm [resolvable:$true] %s45_s17 }
   0xa   :  { %s23_s19 = sshll.u32 %s1076_s18, 4  ;;  %s1077_s3 = smov [#allocation7]   ;;  %s24_s19 = int_to_ptr.vmem [resolvable:$true] %s23_s19 }
   0xb   :  { %26 = dma.hbm_to_vmem [thread:$0]  %s22_s15, 16, %s24_s19, [#allocation3]  }
   0xc   :  { %s47_s20 = sshll.u32 %s1077_s3, 4  ;;  %s70_s23 = sshll.u32 %s1153_s5, 4  ;;  %s48_s20 = int_to_ptr.vmem [resolvable:$true] %s47_s20  ;;  %s71_s23 = int_to_ptr.hbm [resolvable:$true] %s70_s23 }
   0xd   :  { %50 = dma.hbm_to_vmem [thread:$0]  %s46_s17, 32, %s48_s20, [#allocation6]  }
   0xe   :  { %s1078_s0 = smov [#allocation10]   ;;  %s1079_s25 = smov 64  }
   0xf   :  { %s72_s24 = sshll.u32 %s1078_s0, 4  ;;  %s1080_s26 = smov 4   ;;  %s73_s24 = int_to_ptr.vmem [resolvable:$true] %s72_s24 }
  0x10   :  { %78 = dma.hbm_to_vmem [thread:$0]  %s71_s23, 2048, %s73_s24, [#allocation9], %s1079_s25, %s1079_s25, %s1080_s26  }
  0x11   :  { %1064 = dma.done.wait [#allocation3], 16  }
  0x12   :  { %1065 = vsyncadd [#allocation3], 4294967280 }
  0x13   :  { %1066 = dma.done.wait [#allocation6], 1056  }
  0x14   :  { %1067 = vsyncadd [#allocation6], 4294966240 }
  0x15   :  { %1068 = dma.done.wait [#allocation9], 6144  }
  0x16   :  { %1069 = vsyncadd [#allocation9], 4294961152  ;;  %v653_v0 = vld [vmem:[#allocation5 + $0x30] sm:$0xf]  ;;  %v860_v1 = vld [vmem:[#allocation5 + $0x34] sm:$0xf0] }
  0x17   :  { %v859_v2 = vld [vmem:[#allocation5 + $0x34] sm:$0xf]  ;;  %v654_v3 = vor.u32 %v860_v1, %v653_v0  ;;  %v655_v4 = vld [vmem:[#allocation5 + $0x38] sm:$0xf0]  ;;  %v645_v5 = vld [vmem:[#allocation5 + $0x20] sm:$0xf] }
  0x18   :  { %v858_v6 = vld [vmem:[#allocation5 + $0x24] sm:$0xf0]  ;;  %v658_v7 = vor.u32 %v859_v2, %v655_v4  ;;  %v857_v8 = vld [vmem:[#allocation5 + $0x24] sm:$0xf]  ;;  %v647_v9 = vld [vmem:[#allocation5 + $0x28] sm:$0xf0] }
  0x19   :  { %165 = vmatpush.bf16.msra.mxu0 %v654_v3  ;;  %v646_v10 = vor.u32 %v858_v6, %v645_v5  ;;  %v650_v11 = vor.u32 %v857_v8, %v647_v9  ;;  %v637_v12 = vld [vmem:[#allocation5 + $0x10] sm:$0xf]  ;;  %v856_v13 = vld [vmem:[#allocation5 + $0x14] sm:$0xf0]  ;;  %v855_v14 = vld [vmem:[#allocation5 + $0x14] sm:$0xf] }
  0x1a   :  { %178 = vmatpush.bf16.msra.mxu1 %v658_v7  ;;  %v639_v15 = vld [vmem:[#allocation5 + $0x18] sm:$0xf0]  ;;  %v719_v16 = vld [vmem:[#allocation8 + $0x70] sm:$0xf]  ;;  %v629_v17 = vld [vmem:[#allocation5] sm:$0xf]  ;;  %v638_v21 = vor.u32 %v856_v13, %v637_v12 }
  0x1b   :  { %v876_v18 = vld [vmem:[#allocation8 + $0x74] sm:$0xf0]  ;;  %v783_v19 = vld [vmem:[#allocation8 + $0xf0] sm:$0xf]  ;;  %v854_v22 = vld [vmem:[#allocation5 + $0x4] sm:$0xf0]  ;;  %v642_v27 = vor.u32 %v855_v14, %v639_v15 }
  0x1c   :  { %v892_v20 = vld [vmem:[#allocation8 + $0xf4] sm:$0xf0]  ;;  %v853_v23 = vld [vmem:[#allocation5 + $0x4] sm:$0xf]  ;;  %v631_v24 = vld [vmem:[#allocation5 + $0x8] sm:$0xf0]  ;;  %v720_v25 = vor.u32 %v876_v18, %v719_v16  ;;  %v630_v38 = vor.u32 %v854_v22, %v629_v17 }
  0x1d   :  { %166 = vmatpush.bf16.msra.mxu0 %v646_v10  ;;  %v784_v26 = vor.u32 %v892_v20, %v783_v19  ;;  %v875_v28 = vld [vmem:[#allocation8 + $0x74] sm:$0xf]  ;;  %v711_v29 = vld [vmem:[#allocation8 + $0x60] sm:$0xf]  ;;  %v874_v30 = vld [vmem:[#allocation8 + $0x64] sm:$0xf0]  ;;  %v634_v42 = vor.u32 %v853_v23, %v631_v24 }
  0x1e   :  { %179 = vmatpush.bf16.msra.mxu1 %v650_v11  ;;  %391 = vmatpush.bf16.msra.mxu2 %v720_v25  ;;  %v721_v31 = vld [vmem:[#allocation8 + $0x78] sm:$0xf0]  ;;  %v712_v32 = vor.u32 %v874_v30, %v711_v29  ;;  %v775_v33 = vld [vmem:[#allocation8 + $0xe0] sm:$0xf]  ;;  %v890_v34 = vld [vmem:[#allocation8 + $0xe4] sm:$0xf0] }
  0x1f   :  { %404 = vmatpush.bf16.msra.mxu3 %v784_v26  ;;  %v891_v35 = vld [vmem:[#allocation8 + $0xf4] sm:$0xf]  ;;  %v785_v36 = vld [vmem:[#allocation8 + $0xf8] sm:$0xf0]  ;;  %v776_v37 = vor.u32 %v890_v34, %v775_v33  ;;  %v703_v39 = vld [vmem:[#allocation8 + $0x50] sm:$0xf]  ;;  %v724_v43 = vor.u32 %v875_v28, %v721_v31 }
  0x20   :  { %v872_v40 = vld [vmem:[#allocation8 + $0x54] sm:$0xf0]  ;;  %v767_v41 = vld [vmem:[#allocation8 + $0xd0] sm:$0xf]  ;;  %vm157_vm0 = vcmask 523264   ;;  %v788_v45 = vor.u32 %v891_v35, %v785_v36  ;;  %s1081_s28 = smov [#allocation11]  }
  0x21   :  { %167 = vmatpush.bf16.msra.mxu0 %v638_v21  ;;  %v888_v44 = vld [vmem:[#allocation8 + $0xd4] sm:$0xf0]  ;;  %v873_v46 = vld [vmem:[#allocation8 + $0x64] sm:$0xf]  ;;  %v713_v47 = vld [vmem:[#allocation8 + $0x68] sm:$0xf0]  ;;  %v704_v49 = vor.u32 %v872_v40, %v703_v39 }
  0x22   :  { %180 = vmatpush.bf16.msra.mxu1 %v642_v27  ;;  %392 = vmatpush.bf16.msra.mxu2 %v712_v32  ;;  %v889_v48 = vld [vmem:[#allocation8 + $0xe4] sm:$0xf]  ;;  %v777_v50 = vld [vmem:[#allocation8 + $0xe8] sm:$0xf0]  ;;  %v768_v51 = vor.u32 %v888_v44, %v767_v41  ;;  %v695_v52 = vld [vmem:[#allocation8 + $0x40] sm:$0xf]  ;;  %v716_v57 = vor.u32 %v873_v46, %v713_v47 }
  0x23   :  { %405 = vmatpush.bf16.msra.mxu3 %v776_v37  ;;  %v870_v53 = vld [vmem:[#allocation8 + $0x44] sm:$0xf0]  ;;  %v102_v54 = vld [vmem:[#allocation2] sm:$0x1]  ;;  %v759_v55 = vld [vmem:[#allocation8 + $0xc0] sm:$0xf]  ;;  %v780_v58 = vor.u32 %v889_v48, %v777_v50 }
  0x24   :  { %v886_v56 = vld [vmem:[#allocation8 + $0xc4] sm:$0xf0]  ;;  %v871_v59 = vld [vmem:[#allocation8 + $0x54] sm:$0xf]  ;;  %v705_v60 = vld [vmem:[#allocation8 + $0x58] sm:$0xf0]  ;;  %v696_v62 = vor.u32 %v870_v53, %v695_v52 }
  0x25   :  { %168 = vmatpush.bf16.msra.mxu0 %v630_v38  ;;  %v887_v61 = vld [vmem:[#allocation8 + $0xd4] sm:$0xf]  ;;  %v769_v63 = vld [vmem:[#allocation8 + $0xd8] sm:$0xf0]  ;;  %v760_v0 = vor.u32 %v886_v56, %v759_v55  ;;  %v687_v1 = vld [vmem:[#allocation8 + $0x30] sm:$0xf]  ;;  %v708_v5 = vor.u32 %v871_v59, %v705_v60 }
  0x26   :  { %181 = vmatpush.bf16.msra.mxu1 %v634_v42  ;;  %393 = vmatpush.bf16.msra.mxu2 %v704_v49  ;;  %v868_v2 = vld [vmem:[#allocation8 + $0x34] sm:$0xf0]  ;;  %v751_v3 = vld [vmem:[#allocation8 + $0xb0] sm:$0xf]  ;;  %v869_v6 = vld [vmem:[#allocation8 + $0x44] sm:$0xf]  ;;  %v772_v7 = vor.u32 %v887_v61, %v769_v63 }
  0x27   :  { %406 = vmatpush.bf16.msra.mxu3 %v768_v51  ;;  %v884_v4 = vld [vmem:[#allocation8 + $0xb4] sm:$0xf0]  ;;  %v697_v8 = vld [vmem:[#allocation8 + $0x48] sm:$0xf0]  ;;  %v885_v9 = vld [vmem:[#allocation8 + $0xc4] sm:$0xf]  ;;  %v688_v11 = vor.u32 %v868_v2, %v687_v1 }
  0x28   :  { %659 = vmatmul.msk.bf16.vlgmr.msra.gmra.mxu0 %vm157_vm0, %v102_v54  ;;  %v761_v10 = vld [vmem:[#allocation8 + $0xc8] sm:$0xf0]  ;;  %v752_v12 = vor.u32 %v884_v4, %v751_v3  ;;  %v679_v13 = vld [vmem:[#allocation8 + $0x20] sm:$0xf]  ;;  %v866_v14 = vld [vmem:[#allocation8 + $0x24] sm:$0xf0]  ;;  %v700_v17 = vor.u32 %v869_v6, %v697_v8 }
  0x29   :  { %417 = vmatpush.bf16.msrb.mxu0 %v724_v43  ;;  %660 = vmatmul.msk.bf16.vlgmr.msra.gmra.mxu1 %vm157_vm0, %v102_v54  ;;  %v743_v15 = vld [vmem:[#allocation8 + $0xa0] sm:$0xf]  ;;  %v882_v16 = vld [vmem:[#allocation8 + $0xa4] sm:$0xf0]  ;;  %v764_v18 = vor.u32 %v885_v9, %v761_v10  ;;  %v867_v19 = vld [vmem:[#allocation8 + $0x34] sm:$0xf]  ;;  %v680_v21 = vor.u32 %v866_v14, %v679_v13 }
  0x2a   :  { %430 = vmatpush.bf16.msrb.mxu1 %v788_v45  ;;  %394 = vmatpush.bf16.msra.mxu2 %v696_v62  ;;  %v689_v20 = vld [vmem:[#allocation8 + $0x38] sm:$0xf0]  ;;  %v883_v22 = vld [vmem:[#allocation8 + $0xb4] sm:$0xf]  ;;  %v744_v24 = vor.u32 %v882_v16, %v743_v15  ;;  %v865_v27 = vld [vmem:[#allocation8 + $0x24] sm:$0xf] }
  0x2b   :  { %407 = vmatpush.bf16.msra.mxu3 %v760_v0  ;;  %v753_v23 = vld [vmem:[#allocation8 + $0xb8] sm:$0xf0]  ;;  %v692_v25 = vor.u32 %v867_v19, %v689_v20  ;;  %v681_v28 = vld [vmem:[#allocation8 + $0x28] sm:$0xf0]  ;;  %v881_v29 = vld [vmem:[#allocation8 + $0xa4] sm:$0xf] }
  0x2c   :  { %v756_v26 = vor.u32 %v883_v22, %v753_v23  ;;  %v745_v30 = vld [vmem:[#allocation8 + $0xa8] sm:$0xf0]  ;;  %v684_v31 = vor.u32 %v865_v27, %v681_v28  ;;  %v671_v33 = vld [vmem:[#allocation8 + $0x10] sm:$0xf]  ;;  %v864_v34 = vld [vmem:[#allocation8 + $0x14] sm:$0xf0] }
  0x2d   :  { %418 = vmatpush.bf16.msrb.mxu0 %v716_v57  ;;  %v748_v32 = vor.u32 %v881_v29, %v745_v30  ;;  %v672_v35 = vor.u32 %v864_v34, %v671_v33  ;;  %v735_v36 = vld [vmem:[#allocation8 + $0x90] sm:$0xf]  ;;  %v880_v37 = vld [vmem:[#allocation8 + $0x94] sm:$0xf0]  ;;  %v863_v38 = vld [vmem:[#allocation8 + $0x14] sm:$0xf] }
  0x2e   :  { %431 = vmatpush.bf16.msrb.mxu1 %v780_v58  ;;  %395 = vmatpush.bf16.msra.mxu2 %v688_v11  ;;  %v736_v39 = vor.u32 %v880_v37, %v735_v36  ;;  %v673_v40 = vld [vmem:[#allocation8 + $0x18] sm:$0xf0]  ;;  %v879_v41 = vld [vmem:[#allocation8 + $0x94] sm:$0xf]  ;;  %v663_v45 = vld [vmem:[#allocation8] sm:$0xf] }
  0x2f   :  { %408 = vmatpush.bf16.msra.mxu3 %v752_v12  ;;  %v737_v42 = vld [vmem:[#allocation8 + $0x98] sm:$0xf0]  ;;  %v676_v43 = vor.u32 %v863_v38, %v673_v40  ;;  %v862_v46 = vld [vmem:[#allocation8 + $0x4] sm:$0xf0]  ;;  %v727_v47 = vld [vmem:[#allocation8 + $0x80] sm:$0xf] }
  0x30   :  { %v740_v44 = vor.u32 %v879_v41, %v737_v42  ;;  %v664_v48 = vor.u32 %v862_v46, %v663_v45  ;;  %v878_v49 = vld [vmem:[#allocation8 + $0x84] sm:$0xf0]  ;;  %v861_v50 = vld [vmem:[#allocation8 + $0x4] sm:$0xf]  ;;  %v665_v51 = vld [vmem:[#allocation8 + $0x8] sm:$0xf0] }
  0x31   :  { %419 = vmatpush.bf16.msrb.mxu0 %v708_v5  ;;  %v728_v52 = vor.u32 %v878_v49, %v727_v47  ;;  %v668_v53 = vor.u32 %v861_v50, %v665_v51  ;;  %v877_v54 = vld [vmem:[#allocation8 + $0x84] sm:$0xf]  ;;  %v729_v55 = vld [vmem:[#allocation8 + $0x88] sm:$0xf0]  ;;  %v908_v57 = vld [vmem:[#allocation10 + $0x78] sm:$0xff]  ;;  %s613_s29 = sshll.u32 %s1081_s28, 4  ;;  %s614_s29 = int_to_ptr.vmem [resolvable:$true] %s613_s29 }
  0x32   :  { %432 = vmatpush.bf16.msrb.mxu1 %v772_v7  ;;  %396 = vmatpush.bf16.msra.mxu2 %v680_v21  ;;  %v732_v56 = vor.u32 %v877_v54, %v729_v55  ;;  %v900_v58 = vld [vmem:[#allocation10 + $0x38] sm:$0xff]  ;;  %v907_v59 = vld [vmem:[#allocation10 + $0x70] sm:$0xff]  ;;  %v906_v61 = vld [vmem:[#allocation10 + $0x68] sm:$0xff]  ;;  %s615_s9 = sshll.u32 %s1155_s7, 4  ;;  %s616_s9 = int_to_ptr.hbm [resolvable:$true] %s615_s9 }
  0x33   :  { %409 = vmatpush.bf16.msra.mxu3 %v744_v24  ;;  %v899_v60 = vld [vmem:[#allocation10 + $0x30] sm:$0xff]  ;;  %v898_v62 = vld [vmem:[#allocation10 + $0x28] sm:$0xff]  ;;  %v905_v63 = vld [vmem:[#allocation10 + $0x60] sm:$0xff] }
  0x34   :  { %v897_v0 = vld [vmem:[#allocation10 + $0x20] sm:$0xff]  ;;  %v904_v1 = vld [vmem:[#allocation10 + $0x58] sm:$0xff]  ;;  %v902_v19 = vld [vmem:[#allocation10 + $0x48] sm:$0xff] }
  0x35   :  { %420 = vmatpush.bf16.msrb.mxu0 %v700_v17  ;;  %v111_v2 = vld [vmem:[#allocation7] sm:$0x3]  ;;  %v903_v17 = vld [vmem:[#allocation10 + $0x50] sm:$0xff]  ;;  %v901_v21 = vld [vmem:[#allocation10 + $0x40] sm:$0xff] }
  0x36   :  { %433 = vmatpush.bf16.msrb.mxu1 %v764_v18  ;;  %397 = vmatpush.bf16.msra.mxu2 %v672_v35  ;;  %v113_v3 = vperm.slane %v111_v2, 0  ;;  %v114_v4 = vperm.slane %v111_v2, 1  ;;  %v896_v18 = vld [vmem:[#allocation10 + $0x18] sm:$0xff]  ;;  %v895_v20 = vld [vmem:[#allocation10 + $0x10] sm:$0xff]  ;;  %v894_v22 = vld [vmem:[#allocation10 + $0x8] sm:$0xff] }
  0x37   :  { %410 = vmatpush.bf16.msra.mxu3 %v736_v39  ;;  %v893_v23 = vld [vmem:[#allocation10] sm:$0xff]  ;;  %v225_v24 = vld [vmem:[%s1152_s4] sm:$0x3] }
  0x38   :  { %v227_v30 = vperm.slane %v225_v24, 0  ;;  %v919_v46 = vld [vmem:[%s1154_s6] ss:$0 sm:$0xff] }
  0x39   :  { %421 = vmatpush.bf16.msrb.mxu0 %v692_v25  ;;  %v228_v25 = vperm.slane %v225_v24, 1 }
  0x3a   :  { %434 = vmatpush.bf16.msrb.mxu1 %v756_v26  ;;  %398 = vmatpush.bf16.msra.mxu2 %v664_v48 }
  0x3b   :  { %411 = vmatpush.bf16.msra.mxu3 %v728_v52 }
  0x3d   :  { %422 = vmatpush.bf16.msrb.mxu0 %v684_v31 }
  0x3e   :  { %435 = vmatpush.bf16.msrb.mxu1 %v748_v32  ;;  %581 = vmatpush.bf16.msrb.mxu2 %v900_v58 }
  0x3f   :  { %594 = vmatpush.bf16.msrb.mxu3 %v908_v57 }
  0x41   :  { %423 = vmatpush.bf16.msrb.mxu0 %v676_v43 }
  0x42   :  { %436 = vmatpush.bf16.msrb.mxu1 %v740_v44  ;;  %582 = vmatpush.bf16.msrb.mxu2 %v899_v60 }
  0x43   :  { %595 = vmatpush.bf16.msrb.mxu3 %v907_v59 }
  0x45   :  { %424 = vmatpush.bf16.msrb.mxu0 %v668_v53 }
  0x46   :  { %437 = vmatpush.bf16.msrb.mxu1 %v732_v56  ;;  %583 = vmatpush.bf16.msrb.mxu2 %v898_v62 }
  0x47   :  { %596 = vmatpush.bf16.msrb.mxu3 %v906_v61 }
  0x4a   :  { %584 = vmatpush.bf16.msrb.mxu2 %v897_v0 }
  0x4b   :  { %597 = vmatpush.bf16.msrb.mxu3 %v905_v63 }
  0x4e   :  { %585 = vmatpush.bf16.msrb.mxu2 %v896_v18 }
  0x4f   :  { %598 = vmatpush.bf16.msrb.mxu3 %v904_v1 }
  0x52   :  { %586 = vmatpush.bf16.msrb.mxu2 %v895_v20 }
  0x53   :  { %599 = vmatpush.bf16.msrb.mxu3 %v903_v17 }
  0x56   :  { %587 = vmatpush.bf16.msrb.mxu2 %v894_v22 }
  0x57   :  { %600 = vmatpush.bf16.msrb.mxu3 %v902_v19 }
  0x5a   :  { %588 = vmatpush.bf16.msrb.mxu2 %v893_v23 }
  0x5b   :  { %601 = vmatpush.bf16.msrb.mxu3 %v901_v21 }
  0xa5   :  { %v170_v5 = vpop.f32.mrf.mxu0 }
  0xa6   :  { %v171_v6 = vadd.f32 %v170_v5, %v113_v3  ;;  %v183_v7 = vpop.f32.mrf.mxu1 }
  0xa7   :  { %v184_v8 = vadd.f32 %v183_v7, %v114_v4 }
  0xa8   :  { %v187_v9 = vmul.f32 0.01, %v171_v6 }
  0xa9   :  { %v188_v10 = vmul.f32 0.01, %v184_v8 }
  0xaa   :  { %v189_v11 = vmax.f32 %v171_v6, %v187_v9 }
  0xab   :  { %v190_v12 = vmax.f32 %v184_v8, %v188_v10 }
  0xac   :  { %v191_v13 = vpack.c.bf16 %v189_v11, %v189_v11 }
  0xad   :  { %v172_v14 = vpop.f32.mrf.mxu0  ;;  %v192_v15 = vpack.c.bf16 %v190_v12, %v190_v12 }
  0xae   :  { %v185_v16 = vpop.f32.mrf.mxu1  ;;  %399 = vmatmul.bf16.vlgmr.msra.gmra.mxu2 %v191_v13  ;;  %425 = vmatmul.bf16.vlgmr.msrb.gmra.mxu0 %v191_v13 }
  0xaf   :  { %412 = vmatmul.bf16.vlgmr.msra.gmra.mxu3 %v192_v15  ;;  %438 = vmatmul.bf16.vlgmr.msrb.gmra.mxu1 %v192_v15 }
 0x12b   :  { %v426_v26 = vpop.f32.mrf.mxu0 }
 0x12c   :  { %v427_v27 = vadd.f32 %v426_v26, %v228_v25  ;;  %v439_v28 = vpop.f32.mrf.mxu1 }
 0x12e   :  { %v440_v29 = vadd.f32 %v439_v28, %v427_v27 }
 0x130   :  { %v444_v31 = vmul.f32 0.01, %v440_v29 }
 0x131   :  { %v400_v32 = vpop.f32.mrf.mxu2 }
 0x132   :  { %v446_v33 = vmax.f32 %v440_v29, %v444_v31  ;;  %v401_v34 = vadd.f32 %v400_v32, %v227_v30  ;;  %v413_v35 = vpop.f32.mrf.mxu3 }
 0x133   :  { %v428_v36 = vpop.f32.mrf.mxu0 }
 0x134   :  { %v448_v37 = vpack.c.bf16 %v446_v33, %v446_v33  ;;  %v414_v38 = vadd.f32 %v413_v35, %v401_v34  ;;  %v441_v39 = vpop.f32.mrf.mxu1 }
 0x136   :  { %v443_v40 = vmul.f32 0.01, %v414_v38  ;;  %602 = vmatmul.bf16.vlgmr.msrb.gmra.mxu3 %v448_v37 }
 0x138   :  { %v445_v41 = vmax.f32 %v414_v38, %v443_v40 }
 0x139   :  { %v402_v42 = vpop.f32.mrf.mxu2 }
 0x13a   :  { %v447_v43 = vpack.c.bf16 %v445_v41, %v445_v41  ;;  %v415_v44 = vpop.f32.mrf.mxu3 }
 0x13c   :  { %589 = vmatmul.bf16.vlgmr.msrb.gmra.mxu2 %v447_v43 }
 0x1b9   :  { %v603_v45 = vpop.f32.mrf.mxu3 }
 0x1bf   :  { %v590_v47 = vpop.f32.mrf.mxu2 }
 0x1c0   :  { %v591_v48 = vadd.f32 %v919_v46, %v590_v47 }
 0x1c1   :  { %v605_v49 = vpop.f32.mrf.mxu3 }
 0x1c2   :  { %v604_v50 = vadd.f32 %v603_v45, %v591_v48 }
 0x1c4   :  { %607 = vst [vmem:[#allocation11] sm:$0x3] %v604_v50 }
 0x1c5   :  { %618 = dma.vmem_to_hbm [thread:$0]  %s614_s29, 32, %s616_s9, [#allocation4]  }
 0x1c7   :  { %v592_v51 = vpop.f32.mrf.mxu2 }
 0x1c8   :  { %1070 = dma.done.wait [#allocation4], 32  }
 0x1c9   :  { %1071 = vsyncadd [#allocation4], 4294967264 }
 0x1ca   :  { %623 = vsyncpa [#allocation3], 1 }
 0x1cb   :  { %624 = vsyncpa [#allocation6], 1 }
 0x1cc   :  { %625 = vsyncpa [#allocation9], 1 }
 0x1cd   :  { %626 = vsyncpa [#allocation4], 1 }

</bundles_post_ra>
